<compile_context>
chip_gen: v5e
topology: v5e:2x2
jax: 0.10.0
libtpu: 0.0.40
codegen_flags: <defaults>
</compile_context>

<pallas_src>
import functools
from typing import NamedTuple

import jax
import jax.numpy as jnp
from jax.experimental import pallas as pl
from jax.experimental.pallas import tpu as pltpu

_EPS = 1e-5
_LANE = 128     # lane width: output channels padded to this
_SUB = 16       # row-tile granularity (bf16 sublane packing safe)


class _HWConfig(NamedTuple):
    vmem_limit: int
    vmem_budget: int
    tm_target: int
    nsplit: int


@functools.lru_cache(maxsize=None)
def _hw_config():
    """Generation-aware tiling knobs.

    v5e/v6e: 128 MiB VMEM, 1 TensorCore -> big tiles, no forced grid split.
    v7x    : 64 MiB VMEM, 2 TensorCores -> smaller tiles, 2-way 'parallel' split.
    Falls back to the conservative (v7x-safe) config if the query fails.
    """
    vmem_cap = 64 * 1024 * 1024
    try:
        info = pltpu.get_tpu_info()
        vmem_cap = int(getattr(info, "vmem_capacity_bytes", vmem_cap))
    except Exception:
        pass
    if vmem_cap >= 96 * 1024 * 1024:   # v5e / v6e
        return _HWConfig(vmem_limit=64 * 1024 * 1024, vmem_budget=44 * 1024 * 1024,
                         tm_target=1024, nsplit=1)
    # v7x (or unknown)
    return _HWConfig(vmem_limit=32 * 1024 * 1024, vmem_budget=20 * 1024 * 1024,
                     tm_target=512, nsplit=2)


def _round_up(x, m):
    return ((x + m - 1) // m) * m


def _pick_tm(rows, per_row_bytes, fixed_bytes, cfg):
    """Row tile: close to the generation target, >= nsplit real blocks, under budget."""
    tm = _round_up(min(cfg.tm_target, pl.cdiv(rows, cfg.nsplit)), _SUB)
    budget = max(cfg.vmem_budget - fixed_bytes, _SUB * per_row_bytes)
    while tm > _SUB and tm * per_row_bytes > budget:
        tm = _round_up(tm // 2, _SUB)
    return tm


# ----------------------------- Pallas kernels ------------------------------ #

def _conv3x3_kernel(x_hbm, w_ref, b_ref, *rest, tm, halo, ns_inner, ci, taps,
                    relu, aligned, has_mask, has_residual):
    """Fused 3x3/stride-1 conv (+BN bias, +ReLU, +border mask, +residual).

    The (tm + 2*halo, ci) activation slab is manually DMA'd with double buffering
    (slot = s % 2, prefetch of step s+1 overlaps the current step's compute).  For
    lane-aligned ci the 9 shifted slices are packed into a (tm, 9*ci) im2col scratch
    and a single K = 9*ci MXU dot is issued; otherwise 9 per-tap dots are summed.
    """
    rest = list(rest)
    mask_ref = rest.pop(0) if has_mask else None
    r_ref = rest.pop(0) if has_residual else None
    o_ref, slab, sem = rest[0], rest[1], rest[2]
    patch = rest[3] if aligned else None

    c = pl.program_id(0)
    s = pl.program_id(1)
    slot = s % 2
    rows_dma = tm + 2 * halo

    def fetch(local_s, dst_slot):
        start = pl.multiple_of((c * ns_inner + local_s) * tm, _SUB)
        pltpu.make_async_copy(x_hbm.at[pl.ds(start, rows_dma)],
                              slab.at[dst_slot], sem.at[dst_slot]).start()

    @pl.when(s == 0)                       # prime slot 0 at the start of each chunk
    def _():
        fetch(0, 0)

    @pl.when(s + 1 < ns_inner)             # prefetch next inner step, other slot
    def _():
        fetch(s + 1, 1 - slot)

    pltpu.make_async_copy(x_hbm.at[pl.ds(0, rows_dma)],
                          slab.at[slot], sem.at[slot]).wait()

    if aligned:
        # Aligned lane stores assemble the im2col operand; one big MXU matmul keeps
        # the 9-tap accumulation on the MXU result path (no f32 VPU add passes).
        for k, off in enumerate(taps):
            patch[:, k * ci:(k + 1) * ci] = slab[slot, pl.ds(off, tm), :]
        y = jnp.dot(patch[...], w_ref[...], preferred_element_type=jnp.float32)
    else:
        # Small / unaligned ci fallback (only hit for cin < 128 layers).
        # TODO(synk): these layers under-fill the MXU; a packed-K variant would help.
        y = None
        for k, off in enumerate(taps):
            part = jnp.dot(slab[slot, pl.ds(off, tm), :], w_ref[k],
                           preferred_element_type=jnp.float32)
            y = part if y is None else y + part

    y = y + b_ref[...]                     # folded BN bias (scale is in the weights)
    if relu:
        y = jnp.maximum(y, 0.0)
    if has_mask:                           # precomputed interior mask zeroes borders
        y = y * mask_ref[...]
    if has_residual:
        y = y + r_ref[...].astype(jnp.float32)
    o_ref[...] = y.astype(o_ref.dtype)


def _matmul_bn_kernel(p_ref, w_ref, b_ref, o_ref, *, relu):
    y = jnp.dot(p_ref[...], w_ref[...], preferred_element_type=jnp.float32) + b_ref[...]
    if relu:
        y = jnp.maximum(y, 0.0)
    o_ref[...] = y.astype(o_ref.dtype)


# ------------------------------ kernel wrappers ----------------------------- #

def _interior_mask(n, hp, wp, rows_grid):
    """(rows_grid, 1) f32 mask: 1 on interior pixels of the padded grid, 0 on borders."""
    ii = jnp.arange(hp, dtype=jnp.int32)
    jj = jnp.arange(wp, dtype=jnp.int32)
    m2 = (((ii >= 1) & (ii <= hp - 2))[:, None]
          & ((jj >= 1) & (jj <= wp - 2))[None, :])
    m = jnp.broadcast_to(m2[None], (n, hp, wp)).reshape(n * hp * wp, 1)
    m = m.astype(jnp.float32)
    return jnp.pad(m, ((0, rows_grid - n * hp * wp), (0, 0)))


def _conv3x3_s1(xf, n, hp, wp, w_folded, bias, *, relu, zero_border,
                residual=None, out_dtype=jnp.float32):
    """Fused 3x3 stride-1 conv + BN bias (+ReLU)(+border-zeroing)(+residual).

    xf      : (n*hp*wp, ci) activations on their zero-padded spatial grid (bf16-cast).
    w_folded: (9*ci, cpad) bf16 if ci % 128 == 0, else (9, ci, cpad) bf16; BN folded.
    bias    : (1, cpad) f32 folded BN bias.
    residual: optional (n*hp*wp, cpad) array, added in f32 in the epilogue.
    returns : (n*hp*wp, cpad) out_dtype on the same padded grid.
    """
    xf = xf.astype(jnp.bfloat16)
    rows, ci = xf.shape
    cpad = w_folded.shape[-1]
    aligned = (ci % _LANE == 0)
    assert w_folded.ndim == (2 if aligned else 3)
    halo = wp + 1
    cfg = _hw_config()
    out_bytes = jnp.dtype(out_dtype).itemsize

    per_row = (2 * ci * 2                                   # slab (both buffers)
               + 2 * cpad * out_bytes                       # output block (dbl-buf)
               + (9 * ci * 2 if aligned else cpad * 4)      # patch scratch / f32 acc
               + (2 * cpad * 2 if residual is not None else 0)
               + (2 * 4 if zero_border else 0))
    fixed = (2 * 9 * ci * cpad * 2                          # resident weights (dbl-buf)
             + 2 * cpad * 4                                 # bias
             + 2 * (2 * halo) * ci * 2)                     # slab halo rows
    tm = _pick_tm(rows, per_row, fixed, cfg)

    blocks = pl.cdiv(rows, tm)
    nsplit = min(cfg.nsplit, blocks)
    ns_inner = pl.cdiv(blocks, nsplit)
    rows_grid = nsplit * ns_inner * tm

    # Only the slab source is padded (halo rows + grid round-up) so every manual DMA
    # and every output / mask / residual block stays fully in bounds (no ragged blocks).
    xg = jnp.pad(xf, ((halo, halo + rows_grid - rows), (0, 0)))
    taps = tuple(halo + di * wp + dj for di in (-1, 0, 1) for dj in (-1, 0, 1))

    w_ndim = w_folded.ndim
    in_specs = [
        pl.BlockSpec(memory_space=pl.ANY),                             # manual slab DMA
        pl.BlockSpec(w_folded.shape, lambda c, s: (0,) * w_ndim),      # resident weights
        pl.BlockSpec((1, cpad), lambda c, s: (0, 0)),                  # folded BN bias
    ]
    inputs = [xg, w_folded, bias]
    if zero_border:
        inputs.append(_interior_mask(n, hp, wp, rows_grid))
        in_specs.append(pl.BlockSpec((tm, 1), lambda c, s: (c * ns_inner + s, 0)))
    if residual is not None:
        resid = jnp.pad(residual.astype(jnp.bfloat16),
                        ((0, rows_grid - rows), (0, 0)))
        inputs.append(resid)
        in_specs.append(pl.BlockSpec((tm, cpad), lambda c, s: (c * ns_inner + s, 0)))

    scratch = [pltpu.VMEM((2, tm + 2 * halo, ci), jnp.bfloat16),
               pltpu.SemaphoreType.DMA((2,))]
    if aligned:
        scratch.append(pltpu.VMEM((tm, 9 * ci), jnp.bfloat16))

    kernel = functools.partial(
        _conv3x3_kernel, tm=tm, halo=halo, ns_inner=ns_inner, ci=ci, taps=taps,
        relu=relu, aligned=aligned, has_mask=zero_border,
        has_residual=residual is not None)

    flops = 2 * rows_grid * 9 * ci * cpad
    bytes_accessed = (xg.size * 2 + w_folded.size * 2 + bias.size * 4
                      + (rows_grid * 4 if zero_border else 0)
                      + (rows_grid * cpad * 2 if residual is not None else 0)
                      + rows_grid * cpad * out_bytes)

    out = pl.pallas_call(
        kernel,
        out_shape=jax.ShapeDtypeStruct((rows_grid, cpad), out_dtype),
        grid_spec=pltpu.PrefetchScalarGridSpec(
            num_scalar_prefetch=0,
            grid=(nsplit, ns_inner),
            in_specs=in_specs,
            out_specs=pl.BlockSpec((tm, cpad), lambda c, s: (c * ns_inner + s, 0)),
            scratch_shapes=scratch,
        ),
        compiler_params=pltpu.CompilerParams(
            dimension_semantics=("parallel", "arbitrary"),
            vmem_limit_bytes=cfg.vmem_limit),
        cost_estimate=pl.CostEstimate(flops=flops, transcendentals=0,
                                      bytes_accessed=bytes_accessed),
    )(*inputs)
    return out[:rows]


def _matmul_bn(patches, w_mat, bias, *, relu, out_dtype=jnp.bfloat16):
    """Fused (M,K)@(K,Cpad) + BN bias (+ReLU); used for the stride-2 / 1x1 convs."""
    patches = patches.astype(jnp.bfloat16)
    m, k = patches.shape
    cpad = w_mat.shape[1]
    cfg = _hw_config()
    out_bytes = jnp.dtype(out_dtype).itemsize
    per_row = 2 * k * 2 + 2 * cpad * out_bytes + cpad * 4
    fixed = 2 * k * cpad * 2 + 2 * cpad * 4
    tm = _pick_tm(m, per_row, fixed, cfg)
    nsteps = pl.cdiv(m, tm)   # at most one ragged last block (standard auto-pipelining)
    bytes_accessed = (patches.size * 2 + w_mat.size * 2 + bias.size * 4
                      + m * cpad * out_bytes)
    return pl.pallas_call(
        functools.partial(_matmul_bn_kernel, relu=relu),
        out_shape=jax.ShapeDtypeStruct((m, cpad), out_dtype),
        grid_spec=pltpu.PrefetchScalarGridSpec(
            num_scalar_prefetch=0,
            grid=(nsteps,),
            in_specs=[pl.BlockSpec((tm, k), lambda i: (i, 0)),
                      pl.BlockSpec((k, cpad), lambda i: (0, 0)),
                      pl.BlockSpec((1, cpad), lambda i: (0, 0))],
            out_specs=pl.BlockSpec((tm, cpad), lambda i: (i, 0)),
        ),
        compiler_params=pltpu.CompilerParams(
            dimension_semantics=("parallel",),
            vmem_limit_bytes=cfg.vmem_limit),
        cost_estimate=pl.CostEstimate(flops=2 * m * k * cpad, transcendentals=0,
                                      bytes_accessed=bytes_accessed),
    )(patches, w_mat, bias)


# ------------------------- parameter folding (JAX glue) --------------------- #

def _bn_fold(gamma, beta, mean, var):
    scale = gamma / jnp.sqrt(var + _EPS)
    return scale, beta - mean * scale


def _fold_w3x3(w_oihw, scale, cpad, cin_pad=None, flatten=False):
    """OIHW 3x3 weights -> BN-scale-folded bf16 taps, channel padded.

    Returns (9, cin_pad, cpad), or (9*cin_pad, cpad) im2col rows (tap-major) if flatten.
    """
    cout, cin = w_oihw.shape[0], w_oihw.shape[1]
    cin_pad = cin if cin_pad is None else cin_pad
    w = jnp.transpose(w_oihw, (2, 3, 1, 0)) * scale[None, None, None, :]   # (3,3,ci,co)
    w = jnp.pad(w.reshape(9, cin, cout),
                ((0, 0), (0, cin_pad - cin), (0, cpad - cout))).astype(jnp.bfloat16)
    return w.reshape(9 * cin_pad, cpad) if flatten else w


def _fold_w1x1(w_oihw, scale, cpad):
    cout, cin = w_oihw.shape[0], w_oihw.shape[1]
    w = w_oihw.reshape(cout, cin).T * scale[None, :]
    return jnp.pad(w, ((0, 0), (0, cpad - cout))).astype(jnp.bfloat16)


def _pad_bias(bias, cpad):
    return jnp.pad(bias, (0, cpad - bias.shape[0])).reshape(1, cpad).astype(jnp.float32)


# --------------------------------- module ----------------------------------- #

class ResidualBlockPallas:
    """JAX/Pallas equivalent of the PyTorch ResidualBlock (ResNet BasicBlock).

    conv1: 3x3, stride = 2 if in_channels != out_channels else 1, padding 1, no bias
    conv2: 3x3, stride 1, padding 1, no bias
    shortcut: identity if in == out, else 1x1 projection conv (stride 2) + BN
    forward: x = relu(bn1(conv1(x))); x = bn2(conv2(x)); return x + shortcut(input)
    """

    def __init__(self, in_channels, out_channels, key):
        self.cin, self.cout = in_channels, out_channels
        self.cpad = _round_up(out_channels, _LANE)       # lane-dense output width
        self.stride = 2 if in_channels != out_channels else 1
        self.proj = in_channels != out_channels
        ks = jax.random.split(key, 16)

        def nrm(k, shape, s=0.1):
            return s * jax.random.normal(k, shape, jnp.float32)

        # conv weights (PyTorch OIHW)
        self.w1 = nrm(ks[0], (out_channels, in_channels, 3, 3))
        self.w2 = nrm(ks[1], (out_channels, out_channels, 3, 3))
        # bn1 / bn2 parameters + running stats (deterministic, non-trivial)
        self.g1 = 1.0 + nrm(ks[2], (out_channels,))
        self.b1 = nrm(ks[3], (out_channels,))
        self.m1 = nrm(ks[4], (out_channels,))
        self.v1 = 1.0 + 0.1 * jax.random.uniform(ks[5], (out_channels,))
        self.g2 = 1.0 + nrm(ks[6], (out_channels,))
        self.b2 = nrm(ks[7], (out_channels,))
        self.m2 = nrm(ks[8], (out_channels,))
        self.v2 = 1.0 + 0.1 * jax.random.uniform(ks[9], (out_channels,))
        if self.proj:
            self.ws = nrm(ks[10], (out_channels, in_channels, 1, 1))
            self.gs = 1.0 + nrm(ks[11], (out_channels,))
            self.bs = nrm(ks[12], (out_channels,))
            self.ms = nrm(ks[13], (out_channels,))
            self.vs = 1.0 + 0.1 * jax.random.uniform(ks[14], (out_channels,))

    def __call__(self, x):
        n, cin, h, w = x.shape
        assert cin == self.cin
        cout, cpad = self.cout, self.cpad
        # NHWC + bf16 once at the boundary: all downstream pads/slices stay bf16.
        xh = jnp.transpose(x, (0, 2, 3, 1)).astype(jnp.bfloat16)

        s1, b1 = _bn_fold(self.g1, self.b1, self.m1, self.v1)
        s2, b2 = _bn_fold(self.g2, self.b2, self.m2, self.v2)
        b1_row, b2_row = _pad_bias(b1, cpad), _pad_bias(b2, cpad)

        if self.proj:
            ho, wo = (h - 1) // 2 + 1, (w - 1) // 2 + 1
            hp2, wp2 = ho + 2, wo + 2
            # conv1: 3x3 stride-2 -> bn1 -> relu as a bf16 im2col matmul.
            xp = jnp.pad(xh, ((0, 0), (1, 1), (1, 1), (0, 0)))
            taps = [xp[:, ki:ki + 2 * ho:2, kj:kj + 2 * wo:2, :]
                    for ki in range(3) for kj in range(3)]
            patches = jnp.concatenate(taps, axis=-1).reshape(n * ho * wo, 9 * cin)
            h1 = _matmul_bn(patches, _fold_w3x3(self.w1, s1, cpad, flatten=True),
                            b1_row, relu=True, out_dtype=jnp.bfloat16)
            # projection shortcut: 1x1 stride-2 conv -> bn (kept bf16 for HBM traffic)
            ss, bs = _bn_fold(self.gs, self.bs, self.ms, self.vs)
            p_sc = xh[:, ::2, ::2, :].reshape(n * ho * wo, cin)
            shortcut = _matmul_bn(p_sc, _fold_w1x1(self.ws, ss, cpad),
                                  _pad_bias(bs, cpad), relu=False,
                                  out_dtype=jnp.bfloat16)
            # lift onto conv2's padded spatial grid (bf16 layout-only copies).
            h_grid = jnp.pad(h1.reshape(n, ho, wo, cpad),
                             ((0, 0), (1, 1), (1, 1), (0, 0))).reshape(n * hp2 * wp2, cpad)
            resid = jnp.pad(shortcut.reshape(n, ho, wo, cpad),
                            ((0, 0), (1, 1), (1, 1), (0, 0))).reshape(n * hp2 * wp2, cpad)
        else:
            ho, wo = h, w
            hp2, wp2 = h + 2, w + 2
            # conv1: 3x3 stride 1 -> bn1 -> relu with the in-kernel 3x3 gather.  The
            # result lives on the padded grid with zeroed borders, i.e. it is already
            # conv2's zero-padded input (no re-pad, no transpose, bf16 writeback).
            xf1 = jnp.pad(xh, ((0, 0), (1, 1), (1, 1), (0, 0))).reshape(n * hp2 * wp2, cin)
            flat = (cin % _LANE == 0)
            h_grid = _conv3x3_s1(xf1, n, hp2, wp2,
                                 _fold_w3x3(self.w1, s1, cpad, flatten=flat), b1_row,
                                 relu=True, zero_border=True, out_dtype=jnp.bfloat16)
            # identity shortcut: x itself (bf16, channel-padded) on the padded grid.
            # TODO(synk): adding the un-padded (rows, cin) residual in-kernel would cut
            #             this to cin lanes of HBM traffic.
            resid = jnp.pad(xf1, ((0, 0), (0, cpad - cin)))

        # conv2: 3x3 stride 1 -> bn2, fused with the residual add (no trailing
        # activation: the module returns x + residual).
        out_grid = _conv3x3_s1(h_grid, n, hp2, wp2,
                               _fold_w3x3(self.w2, s2, cpad, cin_pad=cpad, flatten=True),
                               b2_row, relu=False, zero_border=False,
                               residual=resid, out_dtype=jnp.float32)
        out = out_grid.reshape(n, hp2, wp2, cpad)[:, 1:ho + 1, 1:wo + 1, :cout]
        return jnp.transpose(out, (0, 3, 1, 2))                     # back to NCHW


# --------------------------- pure-JAX reference ----------------------------- #
# Uses bf16 conv inputs/weights (f32 accumulation) to mirror the kernel's MXU
# precision; BN itself stays in f32 and is NOT folded, so the conv/residual
# wiring is checked independently.

def _ref_conv(x, w, stride, padding):
    return jax.lax.conv_general_dilated(
        x.astype(jnp.bfloat16), w.astype(jnp.bfloat16),
        (stride, stride), [(padding, padding), (padding, padding)],
        dimension_numbers=("NCHW", "OIHW", "NCHW"),
        preferred_element_type=jnp.float32)


def _ref_bn(x, g, b, m, v):
    def e(a):
        return a[None, :, None, None]
    return (x - e(m)) / jnp.sqrt(e(v) + _EPS) * e(g) + e(b)


def _ref_forward(blk, x):
    if blk.proj:
        residual = _ref_bn(_ref_conv(x, blk.ws, blk.stride, 0),
                           blk.gs, blk.bs, blk.ms, blk.vs)
    else:
        residual = x
    h = jnp.maximum(_ref_bn(_ref_conv(x, blk.w1, blk.stride, 1),
                            blk.g1, blk.b1, blk.m1, blk.v1), 0.0)
    h = _ref_bn(_ref_conv(h, blk.w2, 1, 1), blk.g2, blk.b2, blk.m2, blk.v2)
    return h + residual


# --------------------------------- main ------------------------------------ #

if __name__ == "__main__":
    key = jax.random.PRNGKey(0)
    kx, kx2, kb1, kb2, kb3 = jax.random.split(key, 5)
    TOL = 3e-2   # bf16 MXU inputs + folded-BN bf16 weights vs. f32-BN reference

    x = jax.random.normal(kx, (2, 4, 16, 16), jnp.float32)

    # Case 1: projection shortcut (in != out, stride 2)
    blk = ResidualBlockPallas(4, 8, kb1)
    out = jax.block_until_ready(blk(x))
    ref = _ref_forward(blk, x)
    assert out.shape == (2, 8, 8, 8), out.shape
    err = float(jnp.max(jnp.abs(out - ref)))
    assert jnp.allclose(out, ref, rtol=TOL, atol=TOL), err

    # Case 2: identity shortcut (in == out, stride 1)
    blk_id = ResidualBlockPallas(4, 4, kb2)
    out_id = jax.block_until_ready(blk_id(x))
    ref_id = _ref_forward(blk_id, x)
    assert out_id.shape == (2, 4, 16, 16), out_id.shape
    err_id = float(jnp.max(jnp.abs(out_id - ref_id)))
    assert jnp.allclose(out_id, ref_id, rtol=TOL, atol=TOL), err_id

    # Case 3: identity shortcut, larger spatial extent -> multi-step grid, exercises
    # the double-buffered slab DMA / prefetch path and the grid-padding logic.
    x3 = jax.random.normal(kx2, (2, 8, 40, 40), jnp.float32)
    blk3 = ResidualBlockPallas(8, 8, kb3)
    out3 = jax.block_until_ready(blk3(x3))
    ref3 = _ref_forward(blk3, x3)
    assert out3.shape == (2, 8, 40, 40), out3.shape
    err3 = float(jnp.max(jnp.abs(out3 - ref3)))
    assert jnp.allclose(out3, ref3, rtol=TOL, atol=TOL), err3

    print("KERNEL_OK")
</pallas_src>

<mosaic_0001>
module attributes {stable_mosaic.version = 11 : i64} {
  func.func @_matmul_bn_kernel(%arg0: i32, %arg1: memref<64x36xbf16, #tpu.memory_space<vmem>>, %arg2: memref<36x128xbf16, #tpu.memory_space<vmem>>, %arg3: memref<1x128xf32, #tpu.memory_space<vmem>>, %arg4: memref<64x128xbf16, #tpu.memory_space<vmem>>) attributes {dimension_semantics = [#tpu.dimension_semantics<parallel>], iteration_bounds = array<i64: 2>, scalar_prefetch = 0 : i64, scratch_operands = 0 : i64, tpu.core_type = #tpu.core_type<tc>, window_params = [{transform_indices = @transform_0, window_bounds = array<i64: 64, 36>}, {pipeline_mode = #tpu.pipeline_mode<synchronous>, transform_indices = @transform_1, window_bounds = array<i64: 36, 128>}, {pipeline_mode = #tpu.pipeline_mode<synchronous>, transform_indices = @transform_2, window_bounds = array<i64: 1, 128>}, {transform_indices = @transform_3, window_bounds = array<i64: 64, 128>}]} {
    %c0 = arith.constant 0 : index
    %c0_0 = arith.constant 0 : index
    %0 = vector.load %arg1[%c0, %c0_0] : memref<64x36xbf16, #tpu.memory_space<vmem>>, vector<64x36xbf16>
    %c0_1 = arith.constant 0 : index
    %c0_2 = arith.constant 0 : index
    %1 = vector.load %arg2[%c0_1, %c0_2] : memref<36x128xbf16, #tpu.memory_space<vmem>>, vector<36x128xbf16>
    %cst = arith.constant dense<0.000000e+00> : vector<64x128xf32>
    %2 = tpu.matmul %0, %1, %cst {dimension_numbers = #tpu.dot_dimension_numbers<[1], [0], [0], [1], [0, 0, 1, 1], [], []>} : vector<64x36xbf16>, vector<36x128xbf16>, vector<64x128xf32> -> vector<64x128xf32>
    %c0_3 = arith.constant 0 : index
    %c0_4 = arith.constant 0 : index
    %3 = vector.load %arg3[%c0_3, %c0_4] : memref<1x128xf32, #tpu.memory_space<vmem>>, vector<1x128xf32>
    %4 = vector.broadcast %3 : vector<1x128xf32> to vector<64x128xf32>
    %5 = arith.addf %2, %4 : vector<64x128xf32>
    %cst_5 = arith.constant 0.000000e+00 : f32
    %6 = vector.broadcast %cst_5 : f32 to vector<64x128xf32>
    %7 = arith.maximumf %5, %6 : vector<64x128xf32>
    %8 = arith.truncf %7 : vector<64x128xf32> to vector<64x128xbf16>
    %c0_6 = arith.constant 0 : index
    %c0_7 = arith.constant 0 : index
    %9 = vector.load %arg4[%c0_6, %c0_7] : memref<64x128xbf16, #tpu.memory_space<vmem>>, vector<64x128xbf16>
    tpu.vector_store %arg4[%c0_6, %c0_7], %8 {strides = array<i32>} : memref<64x128xbf16, #tpu.memory_space<vmem>>, vector<64x128xbf16>,
    return
  }
  func.func @transform_0(%arg0: i32) -> (i32, i32) {
    %c0_i32 = arith.constant 0 : i32
    %c0_i32_0 = arith.constant 0 : i32
    return %arg0, %c0_i32 : i32, i32
  }
  func.func @transform_1(%arg0: i32) -> (i32, i32) {
    %c0_i32 = arith.constant 0 : i32
    %c0_i32_0 = arith.constant 0 : i32
    %c0_i32_1 = arith.constant 0 : i32
    return %c0_i32, %c0_i32_0 : i32, i32
  }
  func.func @transform_2(%arg0: i32) -> (i32, i32) {
    %c0_i32 = arith.constant 0 : i32
    %c0_i32_0 = arith.constant 0 : i32
    %c0_i32_1 = arith.constant 0 : i32
    return %c0_i32, %c0_i32_0 : i32, i32
  }
  func.func @transform_3(%arg0: i32) -> (i32, i32) {
    %c0_i32 = arith.constant 0 : i32
    %c0_i32_0 = arith.constant 0 : i32
    return %arg0, %c0_i32 : i32, i32
  }
}

</mosaic_0001>

<bundles_post_ra>
// kernel: tpu_custom_call.1
= control target key start
LH: loop header
LB: loop body
LE: loop exit
PB: predicated region body
PF: predicated region fallthrough
CT: control target
= control target key end

     0   :  { %8 = vsyncpa [#allocation3], 0  ;;  %s680_s0 = inlined_call_operand.vmem [shape: bf16[128,36], index: 0, kind: input, shape index: {}]   ;;  %s681_s1 = inlined_call_operand.vmem [shape: bf16[36,128], index: 1, kind: input, shape index: {}]   ;;  %s682_s2 = inlined_call_operand.vmem [shape: f32[1,128], index: 2, kind: input, shape index: {}]   ;;  %s683_s3 = inlined_call_operand.hbm [shape: bf16[128,128], index: 3, kind: output, shape index: {}]  }
   0x1   :  { %10 = vsyncpa [#allocation3 + $0x1], 0  ;;  %s580_s12 = smov 0   ;;  %s582_s13 = smov 0  }
   0x2   :  { %s584_s14 = smov 0   ;;  %s586_s15 = smov 0  }
   0x3 LB: > { %s601_s16 = sadd.s32 4294967295, %s556_s15   ;;  %s373_s17 = sadd.s32 4294967294, %s556_s15   ;;  %s556_s15 = sphi %s586_s15, %s689_s15   ;;  %s552_s14 = sphi %s584_s14, %s688_s14   ;;  %s548_s13 = sphi %s582_s13, %s687_s13   ;;  %s544_s12 = sphi %s580_s12, %s686_s12  }
   0x4   : > { %s605_s18 = sadd.s32 1, %s556_s15   ;;  %s91_s19 = sadd.s32 1, %s552_s14 }
   0x5   : > { %s88_s20 = ssub.s32 %s556_s15, %s605_s18  ;;  %p101_p0 = scmp.ne.s32.totalorder %s552_s14, %s548_s13 }
   0x6   : > { %p89_p1 = scmp.eq.s32.totalorder %s88_s20, 0  ;;  %p102_p2 = scmp.eq.s32.totalorder %s601_s16, 1 }
   0x7   : > { %p107_p3 = scmp.ne.s32.totalorder %s548_s13, %s544_s12  ;;  %p108_p4 = scmp.eq.s32.totalorder %s373_s17, 1 }
   0x8   : > { %s616_s21 = scalar_select %p89_p1, %s552_s14, %s91_s19  }
   0x9   : > { %p618_p5 = por %p102_p2, %p101_p0  ;;  %p622_p6 = por %p108_p4, %p107_p3 }
   0xa   : > { %p376_p7 = scmp.ge.s32.totalorder %s556_s15, 1  ;;  %p141_p8 = scmp.lt.s32.totalorder %s556_s15, 3 }
   0xc   : > { %p142_p9 = pnand %p376_p7, %p141_p8 }
   0xd   : > { %s378_s26 = sshll.u32 (!%p142_p9), %s601_s16, 3  ;;  %s162_s10 = sand.u32 (!%p142_p9), 1, %s548_s13  }
   0xe   : > { %145 = sbr.rel (%p142_p9) target bundleno = 188 (0xbc), region = 32  ;;  %p166_p10 = scmp.lt.s32.totalorder (!%p142_p9), %s378_s26, 15 }
   0xf   : > { %s377_s11 = sshll.u32 (!%p142_p9), %s162_s10, 5  ;;  %s419_s17 = sshll.u32 (!%p142_p9), %s601_s16, 5 }
  0x10   : > { %s307_s24 = scalar_lea.hbm (!%p142_p9), %s683_s3, %s419_s17  ;;  %s164_s25 = scalar_lea.vmem (!%p142_p9), [#allocation2], %s377_s11 }
  0x11   : > { %s310_s27 = sshll.u32 (!%p142_p9), %s307_s24, 4  ;;  %s296_s16 = scalar_lea.sflag (!%p142_p9), [#allocation3], %s162_s10  ;;  %s311_s27 = int_to_ptr.hbm [resolvable:$true] %s310_s27 }
  0x12   : > { %s508_s28 = sshra.s32 (!%p142_p9), %s311_s27, 4  ;;  %s514_s5 = scalar_lea.hbm (!%p142_p9), %s683_s3, 64  ;;  %s509_s28 = int_to_ptr.hbm [resolvable:$true] %s508_s28 }
  0x13   : > { %v185_v0 = vld [vmem:[%s681_s1 + $0x10] sm:$0x3]  ;;  %vm238_vm0 = vcmask 1041408   ;;  %s691_s26 = smov (!%p166_p10, %s378_s26), 15  ;;  %v418_v4 = vld [vmem:[%s681_s1 + $0x8] sm:$0xff]  ;;  %v417_v5 = vld [vmem:[%s681_s1] sm:$0xff]  ;;  %p515_p0 = scmp.lt.s32.totalorder %s509_s28, %s683_s3 }
  0x14   : > { %v219_v1 = vunpack.c.l.b16 %v185_v0  ;;  %s379_s29 = sshll.u32 %s691_s26, 2  ;;  %vm225_vm1 = vcmask 293888   ;;  %v493_v12 = vld [vmem:[%s682_s2] ss:$0 sm:$0xff]  ;;  %s308_s26 = sshll.u32 %s164_s25, 4  ;;  %s309_s26 = int_to_ptr.vmem [resolvable:$true] %s308_s26 }
  0x15   : > { %s169_s7 = scalar_lea.vmem %s680_s0, %s379_s29  ;;  %s510_s29 = scalar_lea.hbm %s509_s28, 32 }
  0x16   : > { %v222_v2 = vpack.c.b16 %v219_v1, %v219_v1  ;;  %v413_v6 = vld [vmem:[%s169_s7] sm:$0xff]  ;;  %v414_v7 = vld [vmem:[%s169_s7 + $0x8] sm:$0xff]  ;;  %v415_v8 = vld [vmem:[%s169_s7 + $0x10] sm:$0xff]  ;;  %p511_p11 = scmp.ne.s32.totalorder %s509_s28, %s510_s29  ;;  %p516_p1 = scmp.lt.s32.totalorder %s514_s5, %s510_s29 }
  0x17   : > { %v416_v9 = vld [vmem:[%s169_s7 + $0x18] sm:$0xff] }
  0x18   : > { %v240_v3 = vsel %vm238_vm0, %v222_v2, 0  ;;  %p512_p12 = pnand %p511_p11, %p618_p5  ;;  %p517_p2 = por %p516_p1, %p515_p0 }
  0x19   : > { %247 = vmatpush.bf16.msra.mxu0 %v240_v3  ;;  %443 = vmatpush.bf16.msra.mxu1 %v240_v3 }
  0x1a   : > { %444 = vmatpush.bf16.msra.mxu2 %v240_v3  ;;  %445 = vmatpush.bf16.msra.mxu3 %v240_v3  ;;  %p513_p13 = pneg %p512_p12 }
  0x1c   : > { %p518_p3 = pnand %p517_p2, %p513_p13 }
  0x1d   : > { %248 = vmatpush.bf16.msra.mxu0 %v418_v4  ;;  %446 = vmatpush.bf16.msra.mxu1 %v418_v4 }
  0x1e   : > { %447 = vmatpush.bf16.msra.mxu2 %v418_v4  ;;  %448 = vmatpush.bf16.msra.mxu3 %v418_v4 }
  0x21   : > { %249 = vmatpush.bf16.msra.mxu0 %v417_v5  ;;  %449 = vmatpush.bf16.msra.mxu1 %v417_v5 }
  0x22   : > { %450 = vmatpush.bf16.msra.mxu2 %v417_v5  ;;  %451 = vmatpush.bf16.msra.mxu3 %v417_v5 }
  0x24   : > { %404 = vmatmul.msk.bf16.vlgmr.msra.gmra.mxu0 %vm225_vm1, %v413_v6  ;;  %405 = vmatmul.msk.bf16.vlgmr.msra.gmra.mxu1 %vm225_vm1, %v414_v7 }
  0x25   : > { %406 = vmatmul.msk.bf16.vlgmr.msra.gmra.mxu2 %vm225_vm1, %v415_v8  ;;  %407 = vmatmul.msk.bf16.vlgmr.msra.gmra.mxu3 %vm225_vm1, %v416_v9 }
  0xa1   : > { %v251_v10 = vpop.f32.mrf.mxu0  ;;  %v256_v11 = vpop.f32.mrf.mxu1 }
  0xa2   : > { %v252_v13 = vadd.f32 %v493_v12, %v251_v10  ;;  %v257_v14 = vadd.f32 %v493_v12, %v256_v11 }
  0xa4   : > { %v271_v21 = vmax.f32 %v252_v13, 0.0  ;;  %v273_v22 = vmax.f32 %v257_v14, 0.0 }
  0xa8   : > { %v261_v15 = vpop.f32.mrf.mxu2  ;;  %v266_v16 = vpop.f32.mrf.mxu3 }
  0xa9   : > { %v253_v17 = vpop.f32.mrf.mxu0  ;;  %v258_v18 = vpop.f32.mrf.mxu1  ;;  %v262_v27 = vadd.f32 %v493_v12, %v261_v15  ;;  %v267_v28 = vadd.f32 %v493_v12, %v266_v16 }
  0xaa   : > { %v254_v19 = vadd.f32 %v493_v12, %v253_v17  ;;  %v259_v20 = vadd.f32 %v493_v12, %v258_v18 }
  0xab   : > { %v275_v33 = vmax.f32 %v262_v27, 0.0  ;;  %v277_v34 = vmax.f32 %v267_v28, 0.0 }
  0xac   : > { %v272_v23 = vmax.f32 %v254_v19, 0.0  ;;  %v274_v24 = vmax.f32 %v259_v20, 0.0 }
  0xae   : > { %v423_v25 = vpack.c.bf16 %v272_v23, %v271_v21  ;;  %v428_v26 = vpack.c.bf16 %v274_v24, %v273_v22 }
  0xb0   : > { %424 = vst [vmem:[%s164_s25] sm:$0xff] %v423_v25   ;;  %v263_v29 = vpop.f32.mrf.mxu2  ;;  %v268_v30 = vpop.f32.mrf.mxu3 }
  0xb1   : > { %440 = vst [vmem:[%s164_s25 + $0x8] sm:$0xff] %v428_v26   ;;  %v264_v31 = vadd.f32 %v493_v12, %v263_v29  ;;  %v269_v32 = vadd.f32 %v493_v12, %v268_v30 }
  0xb3   : > { %v276_v35 = vmax.f32 %v264_v31, 0.0  ;;  %v278_v36 = vmax.f32 %v269_v32, 0.0 }
  0xb5   : > { %v433_v37 = vpack.c.bf16 %v276_v35, %v275_v33  ;;  %v438_v38 = vpack.c.bf16 %v278_v36, %v277_v34 }
  0xb7   : > { %441 = vst [vmem:[%s164_s25 + $0x10] sm:$0xff] %v433_v37  }
  0xb8   : > { %442 = vst [vmem:[%s164_s25 + $0x18] sm:$0xff] %v438_v38  }
  0xb9   : > { %521 = shalt.err (!%p518_p3)
}
  0xba   : > { %s558_s8 = smov 64   ;;  %s559_s9 = smov 4  }
  0xbb   : > { %452 = dma.vmem_to_hbm [thread:$0]  (%p618_p5), %s309_s26, 512, %s311_s27, %s296_s16, %s558_s8, %s558_s8, %s559_s9  }
  0xbc PF: > { %p458_p4 = scmp.ge.s32.totalorder %s556_s15, 2  ;;  %s325_s10 = sand.u32 1, %s544_s12  }
  0xbd   : > { %s326_s11 = scalar_lea.sflag [#allocation3], %s325_s10 }
  0xbe   : > { %p455_p7 = pnand %p458_p4, %p622_p6 }
  0xc0   : > { %p456_p8 = pneg %p455_p7 }
  0xc2   : > { %539 = dma.done.wait (%p456_p8), %s326_s11, 512  }
  0xc3   : > { %541 = vsyncadd (%p456_p8), %s326_s11, 4294966784  ;;  %p13_p9 = scmp.ge.s32.totalorder %s605_s18, 4   ;;  %s686_s12 = smov %s548_s13 }
  0xc4   : > { %s687_s13 = smov %s552_s14  ;;  %s688_s14 = smov %s616_s21 }
  0xc5   : > { %s689_s15 = smov %s605_s18  ;;  %15 = sbr.rel (!%p13_p9) target bundleno = 3 (0x3), region = 67 }
  0xca   :  { %332 = vsyncpa [#allocation3], 1 }
  0xcb   :  { %334 = vsyncpa [#allocation3 + $0x1], 1 }

</bundles_post_ra>
